<compile_context>
chip_gen: v7x
topology: tpu7x:2x2x1
jax: 0.10.0
libtpu: 0.0.40
codegen_flags: <defaults>
</compile_context>

<pallas_src>
import functools
import math

import jax
import jax.numpy as jnp
from jax.experimental import pallas as pl
from jax.experimental.pallas import tpu as pltpu

NUM_HEADS = 8


def _mixer_kernel(x_ref, w_ref, b_ref, o_ref, *, num_heads, matmul_dtype,
                  approx_recip):
    # x_ref: (TB, N, H) [matmul_dtype]  w_ref: (H, 3H)  b_ref: (1, 3H) [f32]
    # o_ref: (TB, N, H) [x.dtype]
    tb, n, h = x_ref.shape
    dh = h // num_heads

    # ---- Fused QKV projection: one wide MXU matmul over all TB*N rows ----
    x2d = x_ref[...].reshape(tb * n, h)                    # already matmul_dtype
    qkv = jnp.dot(x2d, w_ref[...], preferred_element_type=jnp.float32)
    qkv = qkv + b_ref[...]                                  # f32 bias add

    # Static lane slices (no head-split transposes).  The attention scale is
    # already folded into the Q columns of the packed weight/bias.
    q = qkv[:, 0:h].reshape(tb, n, h).astype(matmul_dtype)
    k = qkv[:, h:2 * h].reshape(tb, n, h).astype(matmul_dtype)
    v = qkv[:, 2 * h:3 * h].reshape(tb, n, h).astype(matmul_dtype)

    # ---- Per-head attention (batched over TB via 3-D einsums) ----
    outs = []
    for head in range(num_heads):
        lo = head * dh
        qh = q[:, :, lo:lo + dh]                            # (TB, N, dh)
        kh = k[:, :, lo:lo + dh]
        vh = v[:, :, lo:lo + dh]

        score = jnp.einsum("bnd,bmd->bnm", qh, kh,
                           preferred_element_type=jnp.float32)
        score = score - jnp.max(score, axis=-1, keepdims=True)
        p = jnp.exp(score)
        denom = jnp.sum(p, axis=-1, keepdims=True)
        if approx_recip:
            p = p * pl.reciprocal(denom, approx=True)       # EUP slot, perf path
        else:
            p = p / denom                                   # exact, f32 path

        outs.append(jnp.einsum("bnm,bmd->bnd", p.astype(matmul_dtype), vh,
                               preferred_element_type=jnp.float32))

    # Single lane-dense full-width store (heads concatenated along lanes).
    o_ref[...] = jnp.concatenate(outs, axis=-1).astype(o_ref.dtype)


def mixer_forward(x, params, aux_dim, *, batch_tile=None,
                  matmul_dtype=jnp.bfloat16):
    """x: (B, N, 2*aux_dim).  params: dict of wq,bq,wk,bk,wv,bv (column form)."""
    B, N, H = x.shape
    assert H == 2 * aux_dim and H % NUM_HEADS == 0
    dh = H // NUM_HEADS
    inv_scale = 1.0 / math.sqrt(aux_dim // 8)               # matches the PyTorch module

    # Pack [Wq*scale | Wk | Wv] -> (H, 3H); biases -> (1, 3H) kept in f32.
    w_packed = jnp.concatenate(
        [params["wq"] * inv_scale, params["wk"], params["wv"]],
        axis=1).astype(matmul_dtype)
    b_packed = jnp.concatenate(
        [params["bq"] * inv_scale, params["bk"], params["bv"]],
        axis=0).reshape(1, 3 * H).astype(jnp.float32)

    # Cast the input in the wrapper so the per-step input DMA moves bf16 on the
    # perf path (output stays in x.dtype; softmax math is f32 in-kernel).
    x_in = x.astype(matmul_dtype)

    # Batch tile: ~2048 rows per grid step, but keep >=2 grid steps when B
    # permits so v7x's two TensorCores both get work.
    if batch_tile is None:
        target_rows = 2048
        batch_tile = max(1, min(B, target_rows // max(N, 1)))
        if B >= 2:
            batch_tile = min(batch_tile, max(1, B // 2))
    TB = int(batch_tile)

    # Pad B up to a tile multiple instead of degrading TB for awkward B.
    num_steps = pl.cdiv(B, TB)
    B_pad = num_steps * TB
    if B_pad != B:
        x_in = jnp.pad(x_in, ((0, B_pad - B), (0, 0), (0, 0)))
    grid = (num_steps,)

    kernel = functools.partial(
        _mixer_kernel, num_heads=NUM_HEADS, matmul_dtype=matmul_dtype,
        approx_recip=(matmul_dtype != jnp.float32))

    # Advisory cost estimate for XLA's scheduler.
    flops = (2 * B_pad * N * H * (3 * H)                     # QKV projection
             + 2 * 2 * B_pad * NUM_HEADS * N * N * dh)       # scores + PV
    bytes_accessed = (x_in.size * x_in.dtype.itemsize
                      + B_pad * N * H * x.dtype.itemsize
                      + w_packed.size * w_packed.dtype.itemsize
                      + b_packed.size * 4)
    cost = pl.CostEstimate(flops=flops,
                           transcendentals=B_pad * NUM_HEADS * N * N,
                           bytes_accessed=bytes_accessed)

    out = pl.pallas_call(
        kernel,
        out_shape=jax.ShapeDtypeStruct((B_pad, N, H), x.dtype),
        grid_spec=pltpu.PrefetchScalarGridSpec(
            num_scalar_prefetch=0,
            grid=grid,
            in_specs=[
                pl.BlockSpec((TB, N, H), lambda b: (b, 0, 0)),   # x batch tile
                pl.BlockSpec((H, 3 * H), lambda b: (0, 0)),      # packed QKV weight
                pl.BlockSpec((1, 3 * H), lambda b: (0, 0)),      # packed QKV bias
            ],
            out_specs=pl.BlockSpec((TB, N, H), lambda b: (b, 0, 0)),
        ),
        compiler_params=pltpu.CompilerParams(
            dimension_semantics=("parallel",)),
        cost_estimate=cost,
    )(x_in, w_packed, b_packed)

    return out[:B] if B_pad != B else out


def mixer_reference(x, params, aux_dim):
    """Pure-JAX f32 reference mirroring the PyTorch forward exactly."""
    B, N, H = x.shape
    dh = H // NUM_HEADS
    q = x @ params["wq"] + params["bq"]
    k = x @ params["wk"] + params["bk"]
    v = x @ params["wv"] + params["bv"]
    q = q.reshape(B, N, NUM_HEADS, dh).transpose(0, 2, 1, 3)
    k = k.reshape(B, N, NUM_HEADS, dh).transpose(0, 2, 1, 3)
    v = v.reshape(B, N, NUM_HEADS, dh).transpose(0, 2, 1, 3)
    score = q @ k.transpose(0, 1, 3, 2) / math.sqrt(aux_dim // 8)
    score = jax.nn.softmax(score, axis=-1)
    out = score @ v
    return out.transpose(0, 2, 1, 3).reshape(B, N, H)


def init_params(key, aux_dim):
    """Deterministic parameter init (nn.Linear-style uniform bounds)."""
    H = 2 * aux_dim
    bound = 1.0 / math.sqrt(H)
    keys = jax.random.split(key, 6)

    def u(k, shape):
        return jax.random.uniform(k, shape, jnp.float32, -bound, bound)

    return {
        "wq": u(keys[0], (H, H)), "bq": u(keys[1], (H,)),
        "wk": u(keys[2], (H, H)), "bk": u(keys[3], (H,)),
        "wv": u(keys[4], (H, H)), "bv": u(keys[5], (H,)),
    }


if __name__ == "__main__":
    aux_dim = 32          # H = 2*aux_dim = 64, head_dim = 8
    B, N, H = 2, 8, 2 * aux_dim

    key = jax.random.PRNGKey(0)
    kx, kp, kx3 = jax.random.split(key, 3)
    x = jax.random.normal(kx, (B, N, H), dtype=jnp.float32)
    params = init_params(kp, aux_dim)
    ref = mixer_reference(x, params, aux_dim)

    # 1) f32 MXU path (exact softmax divide): validates kernel logic tightly.
    out_f32 = jax.block_until_ready(
        mixer_forward(x, params, aux_dim, matmul_dtype=jnp.float32))
    assert out_f32.shape == (B, N, H)
    assert jnp.allclose(out_f32, ref, atol=5e-3, rtol=5e-3), \
        "f32-path mismatch vs reference"

    # 2) bf16 MXU perf path (bf16 input DMA, f32 accumulation, approx recip).
    out_bf16 = jax.block_until_ready(mixer_forward(x, params, aux_dim))
    assert out_bf16.shape == (B, N, H)
    assert jnp.allclose(out_bf16, ref, atol=5e-2, rtol=5e-2), \
        "bf16-path mismatch vs reference"

    # 3) Awkward batch: exercises the pad-to-tile-multiple path (B=3, TB=2).
    x3 = jax.random.normal(kx3, (3, N, H), dtype=jnp.float32)
    ref3 = mixer_reference(x3, params, aux_dim)
    out3 = jax.block_until_ready(
        mixer_forward(x3, params, aux_dim, batch_tile=2,
                      matmul_dtype=jnp.float32))
    assert out3.shape == (3, N, H)
    assert jnp.allclose(out3, ref3, atol=5e-3, rtol=5e-3), \
        "padded-batch path mismatch vs reference"

    print("KERNEL_OK")
</pallas_src>

<mosaic_0001>
module attributes {stable_mosaic.version = 11 : i64} {
  func.func @_mixer_kernel(%arg0: i32, %arg1: memref<1x8x64xf32, #tpu.memory_space<vmem>>, %arg2: memref<64x192xf32, #tpu.memory_space<vmem>>, %arg3: memref<1x192xf32, #tpu.memory_space<vmem>>, %arg4: memref<1x8x64xf32, #tpu.memory_space<vmem>>) attributes {dimension_semantics = [#tpu.dimension_semantics<parallel>], iteration_bounds = array<i64: 2>, scalar_prefetch = 0 : i64, scratch_operands = 0 : i64, tpu.core_type = #tpu.core_type<tc>, window_params = [{transform_indices = @transform_0, window_bounds = array<i64: 1, 8, 64>}, {pipeline_mode = #tpu.pipeline_mode<synchronous>, transform_indices = @transform_1, window_bounds = array<i64: 64, 192>}, {pipeline_mode = #tpu.pipeline_mode<synchronous>, transform_indices = @transform_2, window_bounds = array<i64: 1, 192>}, {transform_indices = @transform_3, window_bounds = array<i64: 1, 8, 64>}]} {
    %c0 = arith.constant 0 : index
    %c0_0 = arith.constant 0 : index
    %c0_1 = arith.constant 0 : index
    %0 = vector.load %arg1[%c0, %c0_0, %c0_1] : memref<1x8x64xf32, #tpu.memory_space<vmem>>, vector<1x8x64xf32>
    %1 = vector.shape_cast %0 : vector<1x8x64xf32> to vector<8x64xf32>
    %c0_2 = arith.constant 0 : index
    %c0_3 = arith.constant 0 : index
    %2 = vector.load %arg2[%c0_2, %c0_3] : memref<64x192xf32, #tpu.memory_space<vmem>>, vector<64x192xf32>
    %cst = arith.constant dense<0.000000e+00> : vector<8x192xf32>
    %3 = tpu.matmul %1, %2, %cst {dimension_numbers = #tpu.dot_dimension_numbers<[1], [0], [0], [1], [0, 0, 1, 1], [], []>} : vector<8x64xf32>, vector<64x192xf32>, vector<8x192xf32> -> vector<8x192xf32>
    %c0_4 = arith.constant 0 : index
    %c0_5 = arith.constant 0 : index
    %4 = vector.load %arg3[%c0_4, %c0_5] : memref<1x192xf32, #tpu.memory_space<vmem>>, vector<1x192xf32>
    %5 = vector.broadcast %4 : vector<1x192xf32> to vector<8x192xf32>
    %6 = arith.addf %3, %5 : vector<8x192xf32>
    %7 = vector.extract_strided_slice %6 {offsets = [0, 0], sizes = [8, 64], strides = [1, 1]} : vector<8x192xf32> to vector<8x64xf32>
    %8 = vector.shape_cast %7 : vector<8x64xf32> to vector<1x8x64xf32>
    %9 = vector.extract_strided_slice %6 {offsets = [0, 64], sizes = [8, 64], strides = [1, 1]} : vector<8x192xf32> to vector<8x64xf32>
    %10 = vector.shape_cast %9 : vector<8x64xf32> to vector<1x8x64xf32>
    %11 = vector.extract_strided_slice %6 {offsets = [0, 128], sizes = [8, 64], strides = [1, 1]} : vector<8x192xf32> to vector<8x64xf32>
    %12 = vector.shape_cast %11 : vector<8x64xf32> to vector<1x8x64xf32>
    %13 = vector.extract_strided_slice %8 {offsets = [0, 0, 0], sizes = [1, 8, 8], strides = [1, 1, 1]} : vector<1x8x64xf32> to vector<1x8x8xf32>
    %14 = vector.extract_strided_slice %10 {offsets = [0, 0, 0], sizes = [1, 8, 8], strides = [1, 1, 1]} : vector<1x8x64xf32> to vector<1x8x8xf32>
    %15 = vector.extract_strided_slice %12 {offsets = [0, 0, 0], sizes = [1, 8, 8], strides = [1, 1, 1]} : vector<1x8x64xf32> to vector<1x8x8xf32>
    "tpu.trace_start"() <{level = 10 : i32, message = "bnd,bmd->bnm"}> : () -> ()
    %cst_6 = arith.constant dense<0.000000e+00> : vector<1x8x8xf32>
    %16 = tpu.matmul %13, %14, %cst_6 {dimension_numbers = #tpu.dot_dimension_numbers<[2], [2], [1], [1], [0, 0, 0, 1, 1, 1], [0], [0]>} : vector<1x8x8xf32>, vector<1x8x8xf32>, vector<1x8x8xf32> -> vector<1x8x8xf32>
    "tpu.trace_stop"() : () -> ()
    %cst_7 = arith.constant dense<0xFF800000> : vector<1x8xf32>
    %17 = vector.multi_reduction <maximumf>, %16, %cst_7 [2] : vector<1x8x8xf32> to vector<1x8xf32>
    %18 = vector.shape_cast %17 : vector<1x8xf32> to vector<1x8x1xf32>
    %19 = vector.broadcast %18 : vector<1x8x1xf32> to vector<1x8x8xf32>
    %20 = arith.subf %16, %19 : vector<1x8x8xf32>
    %21 = math.exp %20 : vector<1x8x8xf32>
    %cst_8 = arith.constant dense<0.000000e+00> : vector<1x8xf32>
    %22 = vector.multi_reduction <add>, %21, %cst_8 [2] : vector<1x8x8xf32> to vector<1x8xf32>
    %23 = vector.shape_cast %22 : vector<1x8xf32> to vector<1x8x1xf32>
    %24 = vector.broadcast %23 : vector<1x8x1xf32> to vector<1x8x8xf32>
    %25 = arith.divf %21, %24 : vector<1x8x8xf32>
    "tpu.trace_start"() <{level = 10 : i32, message = "bnm,bmd->bnd"}> : () -> ()
    %cst_9 = arith.constant dense<0.000000e+00> : vector<1x8x8xf32>
    %26 = tpu.matmul %25, %15, %cst_9 {dimension_numbers = #tpu.dot_dimension_numbers<[2], [1], [1], [2], [0, 0, 0, 1, 1, 2], [0], [0]>} : vector<1x8x8xf32>, vector<1x8x8xf32>, vector<1x8x8xf32> -> vector<1x8x8xf32>
    "tpu.trace_stop"() : () -> ()
    %27 = vector.extract_strided_slice %8 {offsets = [0, 0, 8], sizes = [1, 8, 8], strides = [1, 1, 1]} : vector<1x8x64xf32> to vector<1x8x8xf32>
    %28 = vector.extract_strided_slice %10 {offsets = [0, 0, 8], sizes = [1, 8, 8], strides = [1, 1, 1]} : vector<1x8x64xf32> to vector<1x8x8xf32>
    %29 = vector.extract_strided_slice %12 {offsets = [0, 0, 8], sizes = [1, 8, 8], strides = [1, 1, 1]} : vector<1x8x64xf32> to vector<1x8x8xf32>
    "tpu.trace_start"() <{level = 10 : i32, message = "bnd,bmd->bnm"}> : () -> ()
    %cst_10 = arith.constant dense<0.000000e+00> : vector<1x8x8xf32>
    %30 = tpu.matmul %27, %28, %cst_10 {dimension_numbers = #tpu.dot_dimension_numbers<[2], [2], [1], [1], [0, 0, 0, 1, 1, 1], [0], [0]>} : vector<1x8x8xf32>, vector<1x8x8xf32>, vector<1x8x8xf32> -> vector<1x8x8xf32>
    "tpu.trace_stop"() : () -> ()
    %cst_11 = arith.constant dense<0xFF800000> : vector<1x8xf32>
    %31 = vector.multi_reduction <maximumf>, %30, %cst_11 [2] : vector<1x8x8xf32> to vector<1x8xf32>
    %32 = vector.shape_cast %31 : vector<1x8xf32> to vector<1x8x1xf32>
    %33 = vector.broadcast %32 : vector<1x8x1xf32> to vector<1x8x8xf32>
    %34 = arith.subf %30, %33 : vector<1x8x8xf32>
    %35 = math.exp %34 : vector<1x8x8xf32>
    %cst_12 = arith.constant dense<0.000000e+00> : vector<1x8xf32>
    %36 = vector.multi_reduction <add>, %35, %cst_12 [2] : vector<1x8x8xf32> to vector<1x8xf32>
    %37 = vector.shape_cast %36 : vector<1x8xf32> to vector<1x8x1xf32>
    %38 = vector.broadcast %37 : vector<1x8x1xf32> to vector<1x8x8xf32>
    %39 = arith.divf %35, %38 : vector<1x8x8xf32>
    "tpu.trace_start"() <{level = 10 : i32, message = "bnm,bmd->bnd"}> : () -> ()
    %cst_13 = arith.constant dense<0.000000e+00> : vector<1x8x8xf32>
    %40 = tpu.matmul %39, %29, %cst_13 {dimension_numbers = #tpu.dot_dimension_numbers<[2], [1], [1], [2], [0, 0, 0, 1, 1, 2], [0], [0]>} : vector<1x8x8xf32>, vector<1x8x8xf32>, vector<1x8x8xf32> -> vector<1x8x8xf32>
    "tpu.trace_stop"() : () -> ()
    %41 = vector.extract_strided_slice %8 {offsets = [0, 0, 16], sizes = [1, 8, 8], strides = [1, 1, 1]} : vector<1x8x64xf32> to vector<1x8x8xf32>
    %42 = vector.extract_strided_slice %10 {offsets = [0, 0, 16], sizes = [1, 8, 8], strides = [1, 1, 1]} : vector<1x8x64xf32> to vector<1x8x8xf32>
    %43 = vector.extract_strided_slice %12 {offsets = [0, 0, 16], sizes = [1, 8, 8], strides = [1, 1, 1]} : vector<1x8x64xf32> to vector<1x8x8xf32>
    "tpu.trace_start"() <{level = 10 : i32, message = "bnd,bmd->bnm"}> : () -> ()
    %cst_14 = arith.constant dense<0.000000e+00> : vector<1x8x8xf32>
    %44 = tpu.matmul %41, %42, %cst_14 {dimension_numbers = #tpu.dot_dimension_numbers<[2], [2], [1], [1], [0, 0, 0, 1, 1, 1], [0], [0]>} : vector<1x8x8xf32>, vector<1x8x8xf32>, vector<1x8x8xf32> -> vector<1x8x8xf32>
    "tpu.trace_stop"() : () -> ()
    %cst_15 = arith.constant dense<0xFF800000> : vector<1x8xf32>
    %45 = vector.multi_reduction <maximumf>, %44, %cst_15 [2] : vector<1x8x8xf32> to vector<1x8xf32>
    %46 = vector.shape_cast %45 : vector<1x8xf32> to vector<1x8x1xf32>
    %47 = vector.broadcast %46 : vector<1x8x1xf32> to vector<1x8x8xf32>
    %48 = arith.subf %44, %47 : vector<1x8x8xf32>
    %49 = math.exp %48 : vector<1x8x8xf32>
    %cst_16 = arith.constant dense<0.000000e+00> : vector<1x8xf32>
    %50 = vector.multi_reduction <add>, %49, %cst_16 [2] : vector<1x8x8xf32> to vector<1x8xf32>
    %51 = vector.shape_cast %50 : vector<1x8xf32> to vector<1x8x1xf32>
    %52 = vector.broadcast %51 : vector<1x8x1xf32> to vector<1x8x8xf32>
    %53 = arith.divf %49, %52 : vector<1x8x8xf32>
    "tpu.trace_start"() <{level = 10 : i32, message = "bnm,bmd->bnd"}> : () -> ()
    %cst_17 = arith.constant dense<0.000000e+00> : vector<1x8x8xf32>
    %54 = tpu.matmul %53, %43, %cst_17 {dimension_numbers = #tpu.dot_dimension_numbers<[2], [1], [1], [2], [0, 0, 0, 1, 1, 2], [0], [0]>} : vector<1x8x8xf32>, vector<1x8x8xf32>, vector<1x8x8xf32> -> vector<1x8x8xf32>
    "tpu.trace_stop"() : () -> ()
    %55 = vector.extract_strided_slice %8 {offsets = [0, 0, 24], sizes = [1, 8, 8], strides = [1, 1, 1]} : vector<1x8x64xf32> to vector<1x8x8xf32>
    %56 = vector.extract_strided_slice %10 {offsets = [0, 0, 24], sizes = [1, 8, 8], strides = [1, 1, 1]} : vector<1x8x64xf32> to vector<1x8x8xf32>
    %57 = vector.extract_strided_slice %12 {offsets = [0, 0, 24], sizes = [1, 8, 8], strides = [1, 1, 1]} : vector<1x8x64xf32> to vector<1x8x8xf32>
    "tpu.trace_start"() <{level = 10 : i32, message = "bnd,bmd->bnm"}> : () -> ()
    %cst_18 = arith.constant dense<0.000000e+00> : vector<1x8x8xf32>
    %58 = tpu.matmul %55, %56, %cst_18 {dimension_numbers = #tpu.dot_dimension_numbers<[2], [2], [1], [1], [0, 0, 0, 1, 1, 1], [0], [0]>} : vector<1x8x8xf32>, vector<1x8x8xf32>, vector<1x8x8xf32> -> vector<1x8x8xf32>
    "tpu.trace_stop"() : () -> ()
    %cst_19 = arith.constant dense<0xFF800000> : vector<1x8xf32>
    %59 = vector.multi_reduction <maximumf>, %58, %cst_19 [2] : vector<1x8x8xf32> to vector<1x8xf32>
    %60 = vector.shape_cast %59 : vector<1x8xf32> to vector<1x8x1xf32>
    %61 = vector.broadcast %60 : vector<1x8x1xf32> to vector<1x8x8xf32>
    %62 = arith.subf %58, %61 : vector<1x8x8xf32>
    %63 = math.exp %62 : vector<1x8x8xf32>
    %cst_20 = arith.constant dense<0.000000e+00> : vector<1x8xf32>
    %64 = vector.multi_reduction <add>, %63, %cst_20 [2] : vector<1x8x8xf32> to vector<1x8xf32>
    %65 = vector.shape_cast %64 : vector<1x8xf32> to vector<1x8x1xf32>
    %66 = vector.broadcast %65 : vector<1x8x1xf32> to vector<1x8x8xf32>
    %67 = arith.divf %63, %66 : vector<1x8x8xf32>
    "tpu.trace_start"() <{level = 10 : i32, message = "bnm,bmd->bnd"}> : () -> ()
    %cst_21 = arith.constant dense<0.000000e+00> : vector<1x8x8xf32>
    %68 = tpu.matmul %67, %57, %cst_21 {dimension_numbers = #tpu.dot_dimension_numbers<[2], [1], [1], [2], [0, 0, 0, 1, 1, 2], [0], [0]>} : vector<1x8x8xf32>, vector<1x8x8xf32>, vector<1x8x8xf32> -> vector<1x8x8xf32>
    "tpu.trace_stop"() : () -> ()
    %69 = vector.extract_strided_slice %8 {offsets = [0, 0, 32], sizes = [1, 8, 8], strides = [1, 1, 1]} : vector<1x8x64xf32> to vector<1x8x8xf32>
    %70 = vector.extract_strided_slice %10 {offsets = [0, 0, 32], sizes = [1, 8, 8], strides = [1, 1, 1]} : vector<1x8x64xf32> to vector<1x8x8xf32>
    %71 = vector.extract_strided_slice %12 {offsets = [0, 0, 32], sizes = [1, 8, 8], strides = [1, 1, 1]} : vector<1x8x64xf32> to vector<1x8x8xf32>
    "tpu.trace_start"() <{level = 10 : i32, message = "bnd,bmd->bnm"}> : () -> ()
    %cst_22 = arith.constant dense<0.000000e+00> : vector<1x8x8xf32>
    %72 = tpu.matmul %69, %70, %cst_22 {dimension_numbers = #tpu.dot_dimension_numbers<[2], [2], [1], [1], [0, 0, 0, 1, 1, 1], [0], [0]>} : vector<1x8x8xf32>, vector<1x8x8xf32>, vector<1x8x8xf32> -> vector<1x8x8xf32>
    "tpu.trace_stop"() : () -> ()
    %cst_23 = arith.constant dense<0xFF800000> : vector<1x8xf32>
    %73 = vector.multi_reduction <maximumf>, %72, %cst_23 [2] : vector<1x8x8xf32> to vector<1x8xf32>
    %74 = vector.shape_cast %73 : vector<1x8xf32> to vector<1x8x1xf32>
    %75 = vector.broadcast %74 : vector<1x8x1xf32> to vector<1x8x8xf32>
    %76 = arith.subf %72, %75 : vector<1x8x8xf32>
    %77 = math.exp %76 : vector<1x8x8xf32>
    %cst_24 = arith.constant dense<0.000000e+00> : vector<1x8xf32>
    %78 = vector.multi_reduction <add>, %77, %cst_24 [2] : vector<1x8x8xf32> to vector<1x8xf32>
    %79 = vector.shape_cast %78 : vector<1x8xf32> to vector<1x8x1xf32>
    %80 = vector.broadcast %79 : vector<1x8x1xf32> to vector<1x8x8xf32>
    %81 = arith.divf %77, %80 : vector<1x8x8xf32>
    "tpu.trace_start"() <{level = 10 : i32, message = "bnm,bmd->bnd"}> : () -> ()
    %cst_25 = arith.constant dense<0.000000e+00> : vector<1x8x8xf32>
    %82 = tpu.matmul %81, %71, %cst_25 {dimension_numbers = #tpu.dot_dimension_numbers<[2], [1], [1], [2], [0, 0, 0, 1, 1, 2], [0], [0]>} : vector<1x8x8xf32>, vector<1x8x8xf32>, vector<1x8x8xf32> -> vector<1x8x8xf32>
    "tpu.trace_stop"() : () -> ()
    %83 = vector.extract_strided_slice %8 {offsets = [0, 0, 40], sizes = [1, 8, 8], strides = [1, 1, 1]} : vector<1x8x64xf32> to vector<1x8x8xf32>
    %84 = vector.extract_strided_slice %10 {offsets = [0, 0, 40], sizes = [1, 8, 8], strides = [1, 1, 1]} : vector<1x8x64xf32> to vector<1x8x8xf32>
    %85 = vector.extract_strided_slice %12 {offsets = [0, 0, 40], sizes = [1, 8, 8], strides = [1, 1, 1]} : vector<1x8x64xf32> to vector<1x8x8xf32>
    "tpu.trace_start"() <{level = 10 : i32, message = "bnd,bmd->bnm"}> : () -> ()
    %cst_26 = arith.constant dense<0.000000e+00> : vector<1x8x8xf32>
    %86 = tpu.matmul %83, %84, %cst_26 {dimension_numbers = #tpu.dot_dimension_numbers<[2], [2], [1], [1], [0, 0, 0, 1, 1, 1], [0], [0]>} : vector<1x8x8xf32>, vector<1x8x8xf32>, vector<1x8x8xf32> -> vector<1x8x8xf32>
    "tpu.trace_stop"() : () -> ()
    %cst_27 = arith.constant dense<0xFF800000> : vector<1x8xf32>
    %87 = vector.multi_reduction <maximumf>, %86, %cst_27 [2] : vector<1x8x8xf32> to vector<1x8xf32>
    %88 = vector.shape_cast %87 : vector<1x8xf32> to vector<1x8x1xf32>
    %89 = vector.broadcast %88 : vector<1x8x1xf32> to vector<1x8x8xf32>
    %90 = arith.subf %86, %89 : vector<1x8x8xf32>
    %91 = math.exp %90 : vector<1x8x8xf32>
    %cst_28 = arith.constant dense<0.000000e+00> : vector<1x8xf32>
    %92 = vector.multi_reduction <add>, %91, %cst_28 [2] : vector<1x8x8xf32> to vector<1x8xf32>
    %93 = vector.shape_cast %92 : vector<1x8xf32> to vector<1x8x1xf32>
    %94 = vector.broadcast %93 : vector<1x8x1xf32> to vector<1x8x8xf32>
    %95 = arith.divf %91, %94 : vector<1x8x8xf32>
    "tpu.trace_start"() <{level = 10 : i32, message = "bnm,bmd->bnd"}> : () -> ()
    %cst_29 = arith.constant dense<0.000000e+00> : vector<1x8x8xf32>
    %96 = tpu.matmul %95, %85, %cst_29 {dimension_numbers = #tpu.dot_dimension_numbers<[2], [1], [1], [2], [0, 0, 0, 1, 1, 2], [0], [0]>} : vector<1x8x8xf32>, vector<1x8x8xf32>, vector<1x8x8xf32> -> vector<1x8x8xf32>
    "tpu.trace_stop"() : () -> ()
    %97 = vector.extract_strided_slice %8 {offsets = [0, 0, 48], sizes = [1, 8, 8], strides = [1, 1, 1]} : vector<1x8x64xf32> to vector<1x8x8xf32>
    %98 = vector.extract_strided_slice %10 {offsets = [0, 0, 48], sizes = [1, 8, 8], strides = [1, 1, 1]} : vector<1x8x64xf32> to vector<1x8x8xf32>
    %99 = vector.extract_strided_slice %12 {offsets = [0, 0, 48], sizes = [1, 8, 8], strides = [1, 1, 1]} : vector<1x8x64xf32> to vector<1x8x8xf32>
    "tpu.trace_start"() <{level = 10 : i32, message = "bnd,bmd->bnm"}> : () -> ()
    %cst_30 = arith.constant dense<0.000000e+00> : vector<1x8x8xf32>
    %100 = tpu.matmul %97, %98, %cst_30 {dimension_numbers = #tpu.dot_dimension_numbers<[2], [2], [1], [1], [0, 0, 0, 1, 1, 1], [0], [0]>} : vector<1x8x8xf32>, vector<1x8x8xf32>, vector<1x8x8xf32> -> vector<1x8x8xf32>
    "tpu.trace_stop"() : () -> ()
    %cst_31 = arith.constant dense<0xFF800000> : vector<1x8xf32>
    %101 = vector.multi_reduction <maximumf>, %100, %cst_31 [2] : vector<1x8x8xf32> to vector<1x8xf32>
    %102 = vector.shape_cast %101 : vector<1x8xf32> to vector<1x8x1xf32>
    %103 = vector.broadcast %102 : vector<1x8x1xf32> to vector<1x8x8xf32>
    %104 = arith.subf %100, %103 : vector<1x8x8xf32>
    %105 = math.exp %104 : vector<1x8x8xf32>
    %cst_32 = arith.constant dense<0.000000e+00> : vector<1x8xf32>
    %106 = vector.multi_reduction <add>, %105, %cst_32 [2] : vector<1x8x8xf32> to vector<1x8xf32>
    %107 = vector.shape_cast %106 : vector<1x8xf32> to vector<1x8x1xf32>
    %108 = vector.broadcast %107 : vector<1x8x1xf32> to vector<1x8x8xf32>
    %109 = arith.divf %105, %108 : vector<1x8x8xf32>
    "tpu.trace_start"() <{level = 10 : i32, message = "bnm,bmd->bnd"}> : () -> ()
    %cst_33 = arith.constant dense<0.000000e+00> : vector<1x8x8xf32>
    %110 = tpu.matmul %109, %99, %cst_33 {dimension_numbers = #tpu.dot_dimension_numbers<[2], [1], [1], [2], [0, 0, 0, 1, 1, 2], [0], [0]>} : vector<1x8x8xf32>, vector<1x8x8xf32>, vector<1x8x8xf32> -> vector<1x8x8xf32>
    "tpu.trace_stop"() : () -> ()
    %111 = vector.extract_strided_slice %8 {offsets = [0, 0, 56], sizes = [1, 8, 8], strides = [1, 1, 1]} : vector<1x8x64xf32> to vector<1x8x8xf32>
    %112 = vector.extract_strided_slice %10 {offsets = [0, 0, 56], sizes = [1, 8, 8], strides = [1, 1, 1]} : vector<1x8x64xf32> to vector<1x8x8xf32>
    %113 = vector.extract_strided_slice %12 {offsets = [0, 0, 56], sizes = [1, 8, 8], strides = [1, 1, 1]} : vector<1x8x64xf32> to vector<1x8x8xf32>
    "tpu.trace_start"() <{level = 10 : i32, message = "bnd,bmd->bnm"}> : () -> ()
    %cst_34 = arith.constant dense<0.000000e+00> : vector<1x8x8xf32>
    %114 = tpu.matmul %111, %112, %cst_34 {dimension_numbers = #tpu.dot_dimension_numbers<[2], [2], [1], [1], [0, 0, 0, 1, 1, 1], [0], [0]>} : vector<1x8x8xf32>, vector<1x8x8xf32>, vector<1x8x8xf32> -> vector<1x8x8xf32>
    "tpu.trace_stop"() : () -> ()
    %cst_35 = arith.constant dense<0xFF800000> : vector<1x8xf32>
    %115 = vector.multi_reduction <maximumf>, %114, %cst_35 [2] : vector<1x8x8xf32> to vector<1x8xf32>
    %116 = vector.shape_cast %115 : vector<1x8xf32> to vector<1x8x1xf32>
    %117 = vector.broadcast %116 : vector<1x8x1xf32> to vector<1x8x8xf32>
    %118 = arith.subf %114, %117 : vector<1x8x8xf32>
    %119 = math.exp %118 : vector<1x8x8xf32>
    %cst_36 = arith.constant dense<0.000000e+00> : vector<1x8xf32>
    %120 = vector.multi_reduction <add>, %119, %cst_36 [2] : vector<1x8x8xf32> to vector<1x8xf32>
    %121 = vector.shape_cast %120 : vector<1x8xf32> to vector<1x8x1xf32>
    %122 = vector.broadcast %121 : vector<1x8x1xf32> to vector<1x8x8xf32>
    %123 = arith.divf %119, %122 : vector<1x8x8xf32>
    "tpu.trace_start"() <{level = 10 : i32, message = "bnm,bmd->bnd"}> : () -> ()
    %cst_37 = arith.constant dense<0.000000e+00> : vector<1x8x8xf32>
    %124 = tpu.matmul %123, %113, %cst_37 {dimension_numbers = #tpu.dot_dimension_numbers<[2], [1], [1], [2], [0, 0, 0, 1, 1, 2], [0], [0]>} : vector<1x8x8xf32>, vector<1x8x8xf32>, vector<1x8x8xf32> -> vector<1x8x8xf32>
    "tpu.trace_stop"() : () -> ()
    %125 = tpu.concatenate %26, %40, %54, %68, %82, %96, %110, %124 in 2 : vector<1x8x8xf32>, vector<1x8x8xf32>, vector<1x8x8xf32>, vector<1x8x8xf32>, vector<1x8x8xf32>, vector<1x8x8xf32>, vector<1x8x8xf32>, vector<1x8x8xf32> -> vector<1x8x64xf32>
    %c0_38 = arith.constant 0 : index
    %c0_39 = arith.constant 0 : index
    %c0_40 = arith.constant 0 : index
    %126 = vector.load %arg4[%c0_38, %c0_39, %c0_40] : memref<1x8x64xf32, #tpu.memory_space<vmem>>, vector<1x8x64xf32>
    tpu.vector_store %arg4[%c0_38, %c0_39, %c0_40], %125 {strides = array<i32>} : memref<1x8x64xf32, #tpu.memory_space<vmem>>, vector<1x8x64xf32>,
    return
  }
  func.func @transform_0(%arg0: i32) -> (i32, i32, i32) {
    %c0_i32 = arith.constant 0 : i32
    %c0_i32_0 = arith.constant 0 : i32
    %c0_i32_1 = arith.constant 0 : i32
    return %arg0, %c0_i32, %c0_i32_0 : i32, i32, i32
  }
  func.func @transform_1(%arg0: i32) -> (i32, i32) {
    %c0_i32 = arith.constant 0 : i32
    %c0_i32_0 = arith.constant 0 : i32
    %c0_i32_1 = arith.constant 0 : i32
    return %c0_i32, %c0_i32_0 : i32, i32
  }
  func.func @transform_2(%arg0: i32) -> (i32, i32) {
    %c0_i32 = arith.constant 0 : i32
    %c0_i32_0 = arith.constant 0 : i32
    %c0_i32_1 = arith.constant 0 : i32
    return %c0_i32, %c0_i32_0 : i32, i32
  }
  func.func @transform_3(%arg0: i32) -> (i32, i32, i32) {
    %c0_i32 = arith.constant 0 : i32
    %c0_i32_0 = arith.constant 0 : i32
    %c0_i32_1 = arith.constant 0 : i32
    return %arg0, %c0_i32, %c0_i32_0 : i32, i32, i32
  }
}

</mosaic_0001>

<bundles_post_ra>
// kernel: tpu_custom_call.1
= control target key start
LH: loop header
LB: loop body
LE: loop exit
PB: predicated region body
PF: predicated region fallthrough
CT: control target
= control target key end

     0   :  { %8 = vsyncpa [#allocation3], 0  ;;  %s2593_s0 = inlined_call_operand.hbm [shape: f32[2,8,64], index: 0, kind: input, shape index: {}]   ;;  %s2594_s1 = inlined_call_operand.hbm [shape: f32[64,192], index: 1, kind: input, shape index: {}]   ;;  %s2595_s2 = inlined_call_operand.vmem [shape: f32[1,192], index: 2, kind: input, shape index: {}]   ;;  %s2596_s3 = inlined_call_operand.hbm [shape: f32[2,8,64], index: 3, kind: output, shape index: {}]  }
   0x1   :  { %10 = vsyncpa [#allocation3 + $0x1], 0 }
   0x2   :  { %11 = vsyncpa [#allocation6], 0 }
   0x3   :  { %12 = vsyncpa [#allocation4], 0 }
   0x4   :  { %14 = vsyncpa [#allocation4 + $0x1], 0  ;;  %s2206_s12 = smov 0   ;;  %s2208_s13 = smov 0  }
   0x5   :  { %s2210_s14 = smov 0   ;;  %s2212_s15 = smov 0  }
   0x6 LB: > { %s2227_s16 = sadd.s32 4294967295, %s2162_s15   ;;  %s1759_s17 = sadd.s32 4294967294, %s2162_s15   ;;  %s2162_s15 = sphi %s2212_s15, %s2616_s15   ;;  %s2158_s14 = sphi %s2210_s14, %s2615_s14   ;;  %s2154_s13 = sphi %s2208_s13, %s2614_s13   ;;  %s2150_s12 = sphi %s2206_s12, %s2613_s12  }
   0x7   : > { %p40_p0 = scmp.ne.s32.totalorder %s2154_s13, %s2150_s12  ;;  %p2597_p1 = scmp.eq.s32.totalorder %s2227_s16, 0 }
   0x8   : > { %p112_p3 = scmp.eq.s32.totalorder %s1759_s17, 1  ;;  %p1760_p5 = scmp.ge.s32.totalorder %s2162_s15, 1 }
   0x9   : > { %p2236_p4 = por %p2597_p1, %p40_p0  ;;  %p119_p7 = scmp.lt.s32.totalorder %s2162_s15, 3 }
   0xa   : > { %p2241_p6 = por %p112_p3, %p40_p0  ;;  %s2164_s21 = smov [#allocation5]  }
   0xb   : > { %s2600_s18 = scalar_select %p2236_p4, 1, 0 }
   0xc   : > { %s2601_s19 = scalar_select %p2241_p6, 1, 0 }
   0xd   : > { %p2246_p8 = pnand %p1760_p5, %p119_p7  ;;  %s131_s22 = sshll.u32 %s2164_s21, 4  ;;  %s2250_s22 = int_to_ptr.vmem [resolvable:$true] %s131_s22 }
   0xe   : > { %s2262_s24 = sadd.s32 1, %s2162_s15   ;;  %s27_s25 = sadd.s32 1, %s2158_s14 }
   0xf   : > { %s2602_s20 = scalar_select %p2246_p8, 1, 0 }
  0x10   : > { %p1934_p9 = pneg %p2246_p8  ;;  %s24_s26 = ssub.s32 %s2162_s15, %s2262_s24 }
  0x11   : > { %s2034_s29 = scalar_lea.hbm %s2594_s1, 2048 }
  0x12   : > { %p2257_p11 = pnand %p1934_p9, %p2597_p1  ;;  %p2035_p12 = scmp.ne.s32.totalorder %s2594_s1, %s2034_s29 }
  0x13   : > { %p2041_p5 = scmp.lt.u32.totalorder %s2034_s29, %s2594_s1 }
  0x14   : > { %p2036_p13 = pneg %p2257_p11 }
  0x16   : > { %p2037_p0 = pnand %p2036_p13, %p2035_p12 }
  0x18   : > { %p2038_p3 = pneg %p2037_p0 }
  0x1a   : > { %p2043_p7 = pnand %p2041_p5, %p2038_p3 }
  0x1c   : > { %2046 = shalt.err (!%p2043_p7)
}
  0x1d   : > { %s2047_s7 = scalar_lea.vmem %s2250_s22, 2048  ;;  %p2055_p2 = scmp.lt.s32.totalorder %s2250_s22, %s2250_s22 }
  0x1e   : > { %p2048_p9 = scmp.ne.s32.totalorder %s2250_s22, %s2047_s7  ;;  %p2056_p6 = scmp.lt.s32.totalorder %s2047_s7, %s2047_s7 }
  0x20   : > { %p2050_p10 = pnand %p2048_p9, %p2036_p13  ;;  %p2057_p4 = por %p2056_p6, %p2055_p2 }
  0x22   : > { %p2051_p1 = pneg %p2050_p10 }
  0x24   : > { %p2058_p8 = pnand %p2057_p4, %p2051_p1 }
  0x26   : > { %2061 = shalt.err (!%p2058_p8)
}
  0x27   : > { %s2165_s8 = smov 256   ;;  %s2166_s9 = smov 16  }
  0x28   : > { %1937 = dma.hbm_to_vmem [thread:$0]  (!%p2257_p11), %s2594_s1, 2048, %s2250_s22, [#allocation6], %s2165_s8, %s2165_s8, %s2166_s9  }
  0x29   : > { %p25_p2 = scmp.eq.s32.totalorder %s24_s26, 0  ;;  %p34_p1 = scmp.ne.s32.totalorder %s2158_s14, %s2154_s13 }
  0x2a   : > { %p35_p4 = scmp.eq.s32.totalorder %s2162_s15, 0  ;;  %p1947_p6 = scmp.lt.s32.totalorder %s2162_s15, 2 }
  0x2b   : > { %s2293_s17 = scalar_select %p25_p2, %s2158_s14, %s27_s25  }
  0x2c   : > { %p36_p8 = por %p35_p4, %p34_p1  ;;  %p2604_p10 = scmp.eq.s32.totalorder %s2227_s16, 1 }
  0x2d   : > { %s148_s27 = sand.u32 1, %s2158_s14   ;;  %s1764_s28 = sshll.u32 %s2162_s15, 7 }
  0x2e   : > { %p2297_p12 = por %p2604_p10, %p34_p1  ;;  %s1763_s29 = sshll.u32 %s148_s27, 3 }
  0x2f   : > { %s2306_s4 = scalar_lea.hbm %s2593_s0, %s1764_s28  ;;  %s152_s22 = scalar_lea.vmem [#allocation2], %s1763_s29 }
  0x30   : > { %s159_s25 = sshll.u32 %s152_s22, 4  ;;  %p2308_p11 = pnand %p1947_p6, %p36_p8  ;;  %s2312_s25 = int_to_ptr.vmem [resolvable:$true] %s159_s25 }
  0x31   : > { %s149_s5 = scalar_lea.sflag [#allocation3], %s148_s27  ;;  %s2062_s6 = scalar_lea.hbm %s2306_s4, 128 }
  0x32   : > { %p2063_p13 = scmp.ne.s32.totalorder %s2306_s4, %s2062_s6  ;;  %p2064_p0 = pneg %p2308_p11 }
  0x33   : > { %s2067_s9 = scalar_lea.hbm %s2593_s0, 256  ;;  %p2068_p7 = scmp.lt.u32.totalorder %s2306_s4, %s2593_s0 }
  0x34   : > { %p2065_p3 = pnand %p2064_p0, %p2063_p13  ;;  %p2069_p9 = scmp.lt.u32.totalorder %s2067_s9, %s2062_s6 }
  0x35   : > { %p2071_p1 = scmp.lt.u32.totalorder %s2062_s6, %s2306_s4 }
  0x36   : > { %p2066_p5 = pneg %p2065_p3  ;;  %p2070_p2 = por %p2069_p9, %p2068_p7 }
  0x38   : > { %p2072_p4 = por %p2071_p1, %p2070_p2 }
  0x3a   : > { %p2073_p6 = pnand %p2072_p4, %p2066_p5 }
  0x3c   : > { %2076 = shalt.err (!%p2073_p6)
}
  0x3d   : > { %s2077_s27 = scalar_lea.vmem %s2312_s25, 128  ;;  %s2167_s28 = smov [#allocation2]  }
  0x3e   : > { %p2078_p8 = scmp.ne.s32.totalorder %s2312_s25, %s2077_s27  ;;  %s2082_s29 = sshll.u32 %s2167_s28, 4  ;;  %s2083_s29 = int_to_ptr.vmem [resolvable:$false] %s2082_s29 }
  0x3f   : > { %s2084_s23 = scalar_lea.vmem %s2083_s29, 256  ;;  %p2085_p3 = scmp.lt.s32.totalorder %s2312_s25, %s2083_s29 }
  0x40   : > { %p2080_p10 = pnand %p2078_p8, %p2064_p0  ;;  %p2086_p7 = scmp.lt.s32.totalorder %s2084_s23, %s2077_s27 }
  0x42   : > { %p2081_p13 = pneg %p2080_p10  ;;  %p2087_p9 = por %p2086_p7, %p2085_p3 }
  0x44   : > { %p2088_p2 = pnand %p2087_p9, %p2081_p13 }
  0x46   : > { %2091 = shalt.err (!%p2088_p2)
}
  0x47   : > { %1941 = dma.hbm_to_vmem [thread:$0]  (!%p2308_p11), %s2306_s4, 128, %s2312_s25, %s149_s5  }
  0x48   : > { %p2607_p5 = scmp.ne.s32.totalorder %s2602_s20, 0 }
  0x49   : > { %s2342_s30 = sand.u32 (!%p2607_p5), 1, %s2154_s13   ;;  %p2608_p0 = scmp.ne.s32.totalorder (!%p2607_p5), %s2600_s18, 0 }
  0x4a   : > { %168 = sbr.rel (%p2607_p5) target bundleno = 1917 (0x77d), region = 32  ;;  %s1766_s22 = sshll.u32 (!%p2607_p5), %s2342_s30, 3 }
  0x4b   : > { %s171_s6 = scalar_lea.sflag (!%p2607_p5), [#allocation3], %s2342_s30  ;;  %s2348_s7 = scalar_lea.vmem (!%p2607_p5), [#allocation2], %s1766_s22 }
  0x51   : > { %2137 = dma.done.wait (%p2608_p0), %s171_s6, 128  }
  0x52   : > { %2139 = vsyncadd (%p2608_p0), %s171_s6, 4294967168  ;;  %p2609_p11 = scmp.eq.s32.totalorder %s2227_s16, 0 }
  0x54   : > { %2141 = dma.done.wait (%p2609_p11), [#allocation6], 2048   ;;  %p2610_p1 = pmov %p2609_p11 }
  0x55   : > { %v2168_v0 = vmov 0.0   ;;  %v203_v1 = vld [vmem:[#allocation5 + $0x8] sm:$0xff]  ;;  %v205_v2 = vld [vmem:[#allocation5 + $0x18] sm:$0xff]  ;;  %v202_v3 = vld [vmem:[#allocation5] sm:$0xff]  ;;  %vm230_vm0 = vcmask 523264   ;;  %v220_v26 = vlaneseq  ;;  %vm2169_vm1 = vmmov 0  }
  0x56   : > { %2143 = vsyncadd (%p2610_p1), [#allocation6], 4294965248  ;;  %298 = vmatprep.mubr.f32.mxu0 %v2168_v0  ;;  %1830 = vmatprep.subr.mxu1 %v2168_v0  ;;  %v1910_v4 = vpack.c.bf16 %v205_v2, %v203_v1  ;;  %v204_v5 = vld [vmem:[#allocation5 + $0x10] sm:$0xff]  ;;  %v207_v6 = vld [vmem:[#allocation5 + $0x28] sm:$0xff]  ;;  %s2170_s4 = smov 56   ;;  %s2171_s25 = smov 64  }
  0x57   : > { %v209_v7 = vld [vmem:[#allocation5 + $0x38] sm:$0xff]  ;;  %v1912_v8 = vpack.c.bf16 %v204_v5, %v202_v3  ;;  %v206_v10 = vld [vmem:[#allocation5 + $0x20] sm:$0xff]  ;;  %v208_v11 = vld [vmem:[#allocation5 + $0x30] sm:$0xff]  ;;  %v221_v27 = vshrl.u32 %v220_v26, 7  ;;  %1832 = vmatprep.mubr.msk.f32.mxu1 %vm2169_vm1, %v2168_v0  ;;  %s2172_s26 = smov 120   ;;  %s2173_s5 = smov 48  }
  0x58   : > { %v1914_v9 = vpack.c.bf16 %v209_v7, %v207_v6  ;;  %v211_v12 = vld [vmem:[#allocation5 + $0x48] sm:$0xff]  ;;  %1911 = vmatprep.subr.bf16.mxu0 %v1910_v4  ;;  %v213_v13 = vld [vmem:[#allocation5 + $0x58] sm:$0xff]  ;;  %v1916_v14 = vpack.c.bf16 %v208_v11, %v206_v10  ;;  %v210_v16 = vld [vmem:[#allocation5 + $0x40] sm:$0xff]  ;;  %s2174_s8 = smov 112   ;;  %s2175_s9 = smov 40   ;;  %vm308_vm2 = vcmask 64512  }
  0x59   : > { %1913 = vmatpush1.bf16.msra.mxu0 %v1912_v8  ;;  %v1918_v15 = vpack.c.bf16 %v213_v13, %v211_v12  ;;  %v212_v17 = vld [vmem:[#allocation5 + $0x50] sm:$0xff]  ;;  %v215_v18 = vld [vmem:[#allocation5 + $0x68] sm:$0xff]  ;;  %v217_v19 = vld [vmem:[#allocation5 + $0x78] sm:$0xff]  ;;  %v222_v28 = vsub.s32 0, %v221_v27  ;;  %s2176_s10 = smov 32   ;;  %v226_v34 = vsub.s32 1, %v221_v27 }
  0x5a   : > { %1915 = vmatprep.subr.bf16.mxu0 %v1914_v9  ;;  %v1920_v20 = vpack.c.bf16 %v212_v17, %v210_v16  ;;  %v1922_v21 = vpack.c.bf16 %v217_v19, %v215_v18  ;;  %v214_v22 = vld [vmem:[#allocation5 + $0x60] sm:$0xff]  ;;  %v216_v23 = vld [vmem:[#allocation5 + $0x70] sm:$0xff]  ;;  %s2177_s11 = smov 104   ;;  %s2178_s27 = smov 80   ;;  %vm1652_vm3 = vcmask 130048   ;;  %vm1654_vm4 = vcmask 195584  }
  0x5b   : > { %v1924_v24 = vpack.c.bf16 %v216_v23, %v214_v22  ;;  %v201_v25 = vld [vmem:[%s2348_s7] sm:$0xff]  ;;  %s2179_s28 = smov 72   ;;  %s2180_s29 = smov 96   ;;  %vm1656_vm5 = vcmask 261120   ;;  %vm1658_vm6 = vcmask 326656   ;;  %vm1660_vm7 = vcmask 392192  }
  0x5c   : > { %v218_v29 = vld [vmem:[%s2595_s2] sm:$0x3]  ;;  %s2181_s23 = smov 24   ;;  %s2182_s6 = smov 88   ;;  %vm1662_vm8 = vcmask 457728  }
  0x5d   : > { %1917 = vmatpush1.bf16.msra.mxu0 %v1916_v14  ;;  %v223_v30 = vrot.slane %v218_v29, %v222_v28  ;;  %v227_v35 = vrot.slane %v218_v29, %v226_v34  ;;  %s2183_s7 = smov 16   ;;  %s2184_s18 = smov 8  }
  0x5e   : > { %1919 = vmatprep.subr.bf16.mxu0 %v1918_v15  ;;  %s1795_s20 = sshll.u32 %s2227_s16, 7  ;;  %s1666_s16 = scalar_lea.sflag [#allocation4], %s2342_s30 }
  0x61   : > { %1921 = vmatpush1.bf16.msra.mxu0 %v1920_v20 }
  0x62   : > { %1923 = vmatprep.subr.bf16.mxu0 %v1922_v21 }
  0x65   : > { %1925 = vmatpush1.bf16.msra.mxu0 %v1924_v24 }
  0x66   : > { %1850 = vmatprep.subr.mxu0 %v2168_v0 }
  0x68   : > { %1769 = vmatmul.mubr.msk.f32.vlgmr.msra.gmra.mrb[0].mxu0 %vm230_vm0, %v201_v25 }
  0x69   : > { %1852 = vmatprep.mubr.msk.f32.mxu0 %vm2169_vm1, %v2168_v0 }
 0x13b   : > { %v300_v31 = vpop.f32.mrb[0].mxu0 }
 0x13c   : > { %v2370_v32 = vadd.f32 %v300_v31, %v223_v30  ;;  %v302_v33 = vpop.f32.mrb[1].mxu0 }
 0x13d   : > { %v2389_v38 = vadd.f32 %v302_v33, %v227_v35 }
 0x13e   : > { %469 = vrot.lane.b32.xlu1 %v2370_v32, %s2170_s4  ;;  %306 = vrot.lane.b32.xlu0 %v2370_v32, %s2171_s25 }
 0x142   : > { %467 = vrot.lane.b32.xlu1 %v2370_v32, %s2172_s26 }
 0x146   : > { %635 = vrot.lane.b32.xlu1 %v2370_v32, %s2173_s5 }
 0x14a   : > { %633 = vrot.lane.b32.xlu1 %v2370_v32, %s2174_s8 }
 0x14e   : > { %800 = vrot.lane.b32.xlu1 %v2370_v32, %s2175_s9 }
 0x152   : > { %965 = vrot.lane.b32.xlu1 %v2370_v32, %s2176_s10 }
 0x1b0   : > { %v2385_v36 = vpop.permute.xlu1 %469  ;;  %v307_v37 = vpop.permute.xlu0 %306 }
 0x1b1   : > { %1831 = vmatpush3.xpose.msk.msra.mxu1 %vm308_vm2, %v307_v37 }
 0x1b2   : > { %1835 = vmatprep.subr.mxu1 %v2168_v0 }
 0x1b4   : > { %v2391_v39 = vpop.permute.xlu1 %467  ;;  %1833 = vmatmul.mubr.msk.f32.vlgmr.msra.gmra.mrb[0].mxu1 %vm308_vm2, %v2370_v32 }
 0x1b5   : > { %1836 = vmatpush3.msra.mxu1 %v2389_v38  ;;  %1837 = vmatprep.mubr.msk.f32.mxu1 %vm2169_vm1, %v2168_v0 }
 0x1b6   : > { %1840 = vmatprep.subr.mxu1 %v2168_v0 }
 0x1b8   : > { %v636_v40 = vpop.permute.xlu1 %635 }
 0x1b9   : > { %1851 = vmatpush3.xpose.msk.msra.mxu0 %vm308_vm2, %v636_v40 }
 0x1ba   : > { %1860 = vmatprep.subr.mxu0 %v2168_v0 }
 0x1bc   : > { %v634_v41 = vpop.permute.xlu1 %633 }
 0x1bd   : > { %1853 = vmatmul.mubr.msk.f32.vlgmr.msra.gmra.mrb[2].mxu0 %vm308_vm2, %v634_v41 }
 0x1be   : > { %1862 = vmatprep.mubr.msk.f32.mxu0 %vm2169_vm1, %v2168_v0 }
 0x1c0   : > { %v801_v42 = vpop.permute.xlu1 %800 }
 0x1c1   : > { %1861 = vmatpush3.xpose.msk.msra.mxu0 %vm308_vm2, %v801_v42 }
 0x1c2   : > { %1870 = vmatprep.subr.mxu0 %v2168_v0 }
 0x1c4   : > { %v966_v53 = vpop.permute.xlu1 %965 }
 0x287   : > { %v379_v43 = vpop.f32.mrb[0].mxu1 }
 0x288   : > { %v1834_v44 = vpop.f32.mrb[1].mxu1  ;;  %v383_v45 = vsel %vm308_vm2, %v379_v43, -inf }
 0x289   : > { %384 = vmax.xlane.f32.xlu0 %v383_v45 }
 0x290   : > { %v2407_v46 = vpop.f32.mrb[2].mxu0 }
 0x291   : > { %v1854_v47 = vpop.f32.mrb[3].mxu0  ;;  %v711_v48 = vsel %vm308_vm2, %v2407_v46, -inf }
 0x29f   : > { %798 = vrot.lane.b32.xlu0 %v2370_v32, %s2177_s11 }
 0x2a3   : > { %1293 = vrot.lane.b32.xlu0 %v2370_v32, %s2178_s27 }
 0x2a7   : > { %1458 = vrot.lane.b32.xlu0 %v2370_v32, %s2179_s28 }
 0x2c6   : > { %712 = vmax.xlane.f32.xlu0 %v711_v48 }
 0x316   : > { %v385_v49 = vpop.xlane.xlu0 %384 }
 0x317   : > { %v386_v50 = vsub.f32 %v379_v43, %v385_v49 }
 0x319   : > { %v387_v51 = vmul.f32 1.442695, %v386_v50 }
 0x31a   : > { %v799_v52 = vpop.permute.xlu0 %798 }
 0x31b   : > { %2002 = vpow2.f32 %v387_v51  ;;  %1863 = vmatmul.mubr.msk.f32.vlgmr.msra.gmra.mrb[4].mxu0 %vm308_vm2, %v799_v52 }
 0x31c   : > { %1871 = vmatpush3.xpose.msk.msra.mxu0 %vm308_vm2, %v966_v53  ;;  %1872 = vmatprep.mubr.msk.f32.mxu0 %vm2169_vm1, %v2168_v0 }
 0x31d   : > { %1880 = vmatprep.subr.mxu0 %v2168_v0 }
 0x31e   : > { %v1294_v63 = vpop.permute.xlu0 %1293 }
 0x322   : > { %v1459_v2 = vpop.permute.xlu0 %1458 }
 0x325   : > { %v2003_v54 = vpop.eup %2002 }
 0x326   : > { %v389_v55 = vsel %vm308_vm2, %v2003_v54, 0.0 }
 0x327   : > { %390 = vadd.xlane.f32.xlu1 %v389_v55 }
 0x338   : > { %963 = vrot.lane.b32.xlu1 %v2370_v32, %s2180_s29 }
 0x33c   : > { %1130 = vrot.lane.b32.xlu1 %v2370_v32, %s2181_s23 }
 0x340   : > { %1128 = vrot.lane.b32.xlu1 %v2370_v32, %s2182_s6 }
 0x344   : > { %1295 = vrot.lane.b32.xlu1 %v2370_v32, %s2183_s7 }
 0x348   : > { %1460 = vrot.lane.b32.xlu1 %v2370_v32, %s2184_s18 }
 0x353   : > { %v713_v6 = vpop.xlane.xlu0 %712 }
 0x354   : > { %v714_v10 = vsub.f32 %v2407_v46, %v713_v6 }
 0x356   : > { %v715_v12 = vmul.f32 1.442695, %v714_v10 }
 0x3b4   : > { %v391_v56 = vpop.xlane.xlu1 %390 }
 0x3b5   : > { %2004 = vrcp.f32 %v391_v56 }
 0x3b6   : > { %2006 = vpow2.f32 %v715_v12 }
 0x3b8   : > { %v964_v57 = vpop.permute.xlu1 %963 }
 0x3b9   : > { %1873 = vmatmul.mubr.msk.f32.vlgmr.msra.gmra.mrb[6].mxu0 %vm308_vm2, %v964_v57 }
 0x3ba   : > { %1882 = vmatprep.mubr.msk.f32.mxu0 %vm2169_vm1, %v2168_v0 }
 0x3bc   : > { %v1131_v58 = vpop.permute.xlu1 %1130 }
 0x3bd   : > { %1881 = vmatpush3.xpose.msk.msra.mxu0 %vm308_vm2, %v1131_v58 }
 0x3be   : > { %1890 = vmatprep.subr.mxu0 %v2168_v0 }
 0x3bf   : > { %v2005_v59 = vpop.eup %2004 }
 0x3c0   : > { %v393_v60 = vmul.f32 %v2005_v59, %v2003_v54  ;;  %v1129_v61 = vpop.permute.xlu1 %1128  ;;  %v2466_v28 = vpop.eup %2006 }
 0x3c1   : > { %1883 = vmatmul.mubr.msk.f32.vlgmr.msra.gmra.mrb[8].mxu0 %vm308_vm2, %v1129_v61  ;;  %v717_v31 = vsel %vm308_vm2, %v2466_v28, 0.0 }
 0x3c2   : > { %1838 = vmatmul.mubr.msk.f32.vlgmr.msra.gmra.mrb[2].mxu1 %vm308_vm2, %v393_v60  ;;  %1892 = vmatprep.mubr.msk.f32.mxu0 %vm2169_vm1, %v2168_v0 }
 0x3c3   : > { %1841 = vmatpush3.xpose.msk.msra.mxu1 %vm308_vm2, %v2385_v36  ;;  %1842 = vmatprep.mubr.msk.f32.mxu1 %vm2169_vm1, %v2168_v0 }
 0x3c4   : > { %v1296_v62 = vpop.permute.xlu1 %1295  ;;  %1845 = vmatprep.subr.mxu1 %v2168_v0 }
 0x3c5   : > { %1891 = vmatpush3.xpose.msk.msra.mxu0 %vm308_vm2, %v1296_v62 }
 0x3c6   : > { %1843 = vmatmul.mubr.msk.f32.vlgmr.msra.gmra.mrb[4].mxu1 %vm308_vm2, %v2391_v39  ;;  %1900 = vmatprep.subr.mxu0 %v2168_v0 }
 0x3c7   : > { %1847 = vmatprep.mubr.msk.f32.mxu1 %vm2169_vm1, %v2168_v0 }
 0x3c8   : > { %v1461_v1 = vpop.permute.xlu1 %1460  ;;  %1893 = vmatmul.mubr.msk.f32.vlgmr.msra.gmra.mrb[10].mxu0 %vm308_vm2, %v1294_v63 }
 0x3c9   : > { %1901 = vmatpush3.xpose.msk.msra.mxu0 %vm308_vm2, %v1461_v1  ;;  %1902 = vmatprep.mubr.msk.f32.mxu0 %vm2169_vm1, %v2168_v0 }
 0x3cc   : > { %1903 = vmatmul.mubr.msk.f32.vlgmr.msra.gmra.mrb[12].mxu0 %vm308_vm2, %v1459_v2 }
 0x3ee   : > { %v872_v3 = vpop.f32.mrb[4].mxu0 }
 0x3ef   : > { %v1864_v4 = vpop.f32.mrb[5].mxu0  ;;  %v876_v5 = vsel %vm308_vm2, %v872_v3, -inf }
 0x3f0   : > { %877 = vmax.xlane.f32.xlu0 %v876_v5 }
 0x47d   : > { %v878_v9 = vpop.xlane.xlu0 %877 }
 0x47e   : > { %v879_v11 = vsub.f32 %v872_v3, %v878_v9 }
 0x480   : > { %v880_v14 = vmul.f32 1.442695, %v879_v11 }
 0x482   : > { %2008 = vpow2.f32 %v880_v14 }
 0x48c   : > { %v1037_v7 = vpop.f32.mrb[6].mxu0  ;;  %v2469_v30 = vpop.eup %2008 }
 0x48d   : > { %v1874_v8 = vpop.f32.mrb[7].mxu0  ;;  %v1041_v24 = vsel %vm308_vm2, %v1037_v7, -inf  ;;  %v882_v32 = vsel %vm308_vm2, %v2469_v30, 0.0 }
 0x494   : > { %v1202_v13 = vpop.f32.mrb[8].mxu0 }
 0x495   : > { %v2460_v15 = vpop.f32.mrb[2].mxu1  ;;  %v1884_v16 = vpop.f32.mrb[9].mxu0  ;;  %v1206_v17 = vsel %vm308_vm2, %v1202_v13, -inf }
 0x496   : > { %1207 = vmax.xlane.f32.xlu0 %v1206_v17  ;;  %v1839_v18 = vpop.f32.mrb[3].mxu1 }
 0x499   : > { %v541_v19 = vpop.f32.mrb[4].mxu1 }
 0x49a   : > { %v1844_v20 = vpop.f32.mrb[5].mxu1  ;;  %v545_v21 = vsel %vm308_vm2, %v541_v19, -inf }
 0x49b   : > { %v1367_v22 = vpop.f32.mrb[10].mxu0  ;;  %546 = vmax.xlane.f32.xlu1 %v545_v21 }
 0x49c   : > { %v1894_v23 = vpop.f32.mrb[11].mxu0  ;;  %v1371_v29 = vsel %vm308_vm2, %v1367_v22, -inf }
 0x49f   : > { %v1532_v25 = vpop.f32.mrb[12].mxu0  ;;  %1042 = vmax.xlane.f32.xlu1 %v1041_v24 }
 0x4a0   : > { %v1904_v26 = vpop.f32.mrb[13].mxu0  ;;  %v1536_v27 = vsel %vm308_vm2, %v1532_v25, -inf }
 0x4a1   : > { %1537 = vmax.xlane.f32.xlu0 %v1536_v27 }
 0x4a3   : > { %1372 = vmax.xlane.f32.xlu1 %v1371_v29 }
 0x4a5   : > { %718 = vadd.xlane.f32.xlu0 %v717_v31 }
 0x4a7   : > { %883 = vadd.xlane.f32.xlu1 %v882_v32 }
 0x523   : > { %v1208_v33 = vpop.xlane.xlu0 %1207 }
 0x524   : > { %v1209_v34 = vsub.f32 %v1202_v13, %v1208_v33 }
 0x526   : > { %v1210_v35 = vmul.f32 1.442695, %v1209_v34 }
 0x528   : > { %2010 = vpow2.f32 %v1210_v35  ;;  %v547_v36 = vpop.xlane.xlu1 %546 }
 0x529   : > { %v548_v55 = vsub.f32 %v541_v19, %v547_v36 }
 0x52b   : > { %v549_v56 = vmul.f32 1.442695, %v548_v55 }
 0x52c   : > { %v1043_v37 = vpop.xlane.xlu1 %1042 }
 0x52d   : > { %v1044_v39 = vsub.f32 %v1037_v7, %v1043_v37 }
 0x52e   : > { %v1538_v40 = vpop.xlane.xlu0 %1537 }
 0x52f   : > { %v1045_v41 = vmul.f32 1.442695, %v1044_v39  ;;  %v1539_v42 = vsub.f32 %v1532_v25, %v1538_v40 }
 0x530   : > { %v1373_v43 = vpop.xlane.xlu1 %1372 }
 0x531   : > { %2012 = vpow2.f32 %v1045_v41  ;;  %v1540_v44 = vmul.f32 1.442695, %v1539_v42  ;;  %v1374_v45 = vsub.f32 %v1367_v22, %v1373_v43 }
 0x532   : > { %v2475_v46 = vpop.eup %2010  ;;  %v719_v59 = vpop.xlane.xlu0 %718 }
 0x533   : > { %2014 = vpow2.f32 %v1540_v44  ;;  %v1375_v47 = vmul.f32 1.442695, %v1374_v45  ;;  %v1212_v48 = vsel %vm308_vm2, %v2475_v46, 0.0 }
 0x534   : > { %1213 = vadd.xlane.f32.xlu1 %v1212_v48  ;;  %v884_v63 = vpop.xlane.xlu1 %883 }
 0x535   : > { %2016 = vpow2.f32 %v1375_v47 }
 0x536   : > { %2018 = vpow2.f32 %v549_v56 }
 0x53b   : > { %v2013_v49 = vpop.eup %2012 }
 0x53c   : > { %v1047_v50 = vsel %vm308_vm2, %v2013_v49, 0.0 }
 0x53d   : > { %v2480_v51 = vpop.eup %2014  ;;  %1048 = vadd.xlane.f32.xlu0 %v1047_v50 }
 0x53e   : > { %v1542_v52 = vsel %vm308_vm2, %v2480_v51, 0.0 }
 0x53f   : > { %v2484_v53 = vpop.eup %2016  ;;  %1543 = vadd.xlane.f32.xlu1 %v1542_v52 }
 0x540   : > { %v1377_v54 = vsel %vm308_vm2, %v2484_v53, 0.0  ;;  %v2019_v57 = vpop.eup %2018 }
 0x541   : > { %1378 = vadd.xlane.f32.xlu0 %v1377_v54  ;;  %v551_v58 = vsel %vm308_vm2, %v2019_v57, 0.0 }
 0x550   : > { %722 = vrot.lane.b32.xlu1 %v2389_v38, %s2174_s8  ;;  %s2548_s8 = scalar_lea.hbm %s2596_s3, %s1795_s20 }
 0x557   : > { %557 = vrot.lane.b32.xlu0 %v2389_v38, %s2172_s26 }
 0x55b   : > { %1052 = vrot.lane.b32.xlu0 %v2389_v38, %s2180_s29 }
 0x55f   : > { %1382 = vrot.lane.b32.xlu0 %v2389_v38, %s2178_s27 }
 0x574   : > { %552 = vadd.xlane.f32.xlu1 %v551_v58 }
 0x585   : > { %887 = vrot.lane.b32.xlu1 %v2389_v38, %s2177_s11 }
 0x589   : > { %1217 = vrot.lane.b32.xlu1 %v2389_v38, %s2182_s6 }
 0x58d   : > { %1547 = vrot.lane.b32.xlu1 %v2389_v38, %s2179_s28 }
 0x5c1   : > { %v1214_v1 = vpop.xlane.xlu1 %1213 }
 0x5ca   : > { %v1049_v60 = vpop.xlane.xlu0 %1048 }
 0x5cc   : > { %v1544_v2 = vpop.xlane.xlu1 %1543 }
 0x5ce   : > { %v1379_v61 = vpop.xlane.xlu0 %1378 }
 0x5d0   : > { %v723_v3 = vpop.permute.xlu1 %722 }
 0x5d2   : > { %v558_v62 = vpop.permute.xlu0 %557 }
 0x5d3   : > { %1846 = vmatpush3.msra.mxu1 %v558_v62 }
 0x5d4   : > { %1855 = vmatprep.subr.mxu1 %v2168_v0 }
 0x5d6   : > { %v1053_v12 = vpop.permute.xlu0 %1052 }
 0x5da   : > { %v1383_v19 = vpop.permute.xlu0 %1382 }
 0x601   : > { %v553_v4 = vpop.xlane.xlu1 %552 }
 0x602   : > { %2020 = vrcp.f32 %v553_v4 }
 0x603   : > { %2022 = vrcp.f32 %v719_v59 }
 0x604   : > { %2024 = vrcp.f32 %v884_v63 }
 0x605   : > { %2026 = vrcp.f32 %v1049_v60  ;;  %v888_v9 = vpop.permute.xlu1 %887 }
 0x606   : > { %2028 = vrcp.f32 %v1214_v1 }
 0x607   : > { %2030 = vrcp.f32 %v1379_v61 }
 0x608   : > { %2032 = vrcp.f32 %v1544_v2 }
 0x609   : > { %v1218_v16 = vpop.permute.xlu1 %1217 }
 0x60c   : > { %v2021_v5 = vpop.eup %2020 }
 0x60d   : > { %v555_v6 = vmul.f32 %v2021_v5, %v2019_v57  ;;  %v2023_v7 = vpop.eup %2022  ;;  %v1548_v22 = vpop.permute.xlu1 %1547 }
 0x60e   : > { %v721_v38 = vmul.f32 %v2023_v7, %v2466_v28  ;;  %v2025_v8 = vpop.eup %2024 }
 0x60f   : > { %1848 = vmatmul.mubr.msk.f32.vlgmr.msra.gmra.mrb[6].mxu1 %vm308_vm2, %v555_v6  ;;  %v886_v10 = vmul.f32 %v2025_v8, %v2469_v30  ;;  %v2027_v11 = vpop.eup %2026 }
 0x610   : > { %1856 = vmatpush3.msra.mxu1 %v723_v3  ;;  %1857 = vmatprep.mubr.msk.f32.mxu1 %vm2169_vm1, %v2168_v0  ;;  %v1051_v13 = vmul.f32 %v2027_v11, %v2013_v49  ;;  %v2029_v14 = vpop.eup %2028 }
 0x611   : > { %1865 = vmatprep.subr.mxu1 %v2168_v0  ;;  %v1216_v17 = vmul.f32 %v2029_v14, %v2475_v46  ;;  %v2031_v18 = vpop.eup %2030 }
 0x612   : > { %v1381_v20 = vmul.f32 %v2031_v18, %v2484_v53  ;;  %v2033_v21 = vpop.eup %2032 }
 0x613   : > { %1858 = vmatmul.mubr.msk.f32.vlgmr.msra.gmra.mrb[8].mxu1 %vm308_vm2, %v721_v38  ;;  %v1546_v23 = vmul.f32 %v2033_v21, %v2480_v51 }
 0x614   : > { %1866 = vmatpush3.msra.mxu1 %v888_v9  ;;  %1867 = vmatprep.mubr.msk.f32.mxu1 %vm2169_vm1, %v2168_v0 }
 0x615   : > { %1875 = vmatprep.subr.mxu1 %v2168_v0 }
 0x617   : > { %1868 = vmatmul.mubr.msk.f32.vlgmr.msra.gmra.mrb[10].mxu1 %vm308_vm2, %v886_v10 }
 0x618   : > { %1876 = vmatpush3.msra.mxu1 %v1053_v12  ;;  %1877 = vmatprep.mubr.msk.f32.mxu1 %vm2169_vm1, %v2168_v0 }
 0x619   : > { %1885 = vmatprep.subr.mxu1 %v2168_v0 }
 0x61b   : > { %1878 = vmatmul.mubr.msk.f32.vlgmr.msra.gmra.mrb[12].mxu1 %vm308_vm2, %v1051_v13 }
 0x61c   : > { %1886 = vmatpush3.msra.mxu1 %v1218_v16  ;;  %1887 = vmatprep.mubr.msk.f32.mxu1 %vm2169_vm1, %v2168_v0 }
 0x61d   : > { %1895 = vmatprep.subr.mxu1 %v2168_v0 }
 0x61f   : > { %1888 = vmatmul.mubr.msk.f32.vlgmr.msra.gmra.mrb[14].mxu1 %vm308_vm2, %v1216_v17 }
 0x620   : > { %1896 = vmatpush3.msra.mxu1 %v1383_v19  ;;  %1897 = vmatprep.mubr.msk.f32.mxu1 %vm2169_vm1, %v2168_v0 }
 0x621   : > { %1905 = vmatprep.subr.mxu1 %v2168_v0 }
 0x623   : > { %1898 = vmatmul.mubr.msk.f32.vlgmr.msra.gmra.mrb[16].mxu1 %vm308_vm2, %v1381_v20 }
 0x624   : > { %1906 = vmatpush3.msra.mxu1 %v1548_v22  ;;  %1907 = vmatprep.mubr.msk.f32.mxu1 %vm2169_vm1, %v2168_v0 }
 0x627   : > { %1908 = vmatmul.mubr.msk.f32.vlgmr.msra.gmra.mrb[18].mxu1 %vm308_vm2, %v1546_v23 }
 0x6e2   : > { %v629_v24 = vpop.f32.mrb[6].mxu1 }
 0x6e3   : > { %1624 = vrot.lane.b32.xlu0 %v629_v24, %s2184_s18  ;;  %v1849_v25 = vpop.f32.mrb[7].mxu1 }
 0x6e6   : > { %v794_v26 = vpop.f32.mrb[8].mxu1 }
 0x6e7   : > { %1628 = vrot.lane.b32.xlu1 %v794_v26, %s2183_s7  ;;  %v1859_v27 = vpop.f32.mrb[9].mxu1 }
 0x6ea   : > { %v959_v28 = vpop.f32.mrb[10].mxu1 }
 0x6eb   : > { %1632 = vrot.lane.b32.xlu0 %v959_v28, %s2181_s23  ;;  %v1869_v29 = vpop.f32.mrb[11].mxu1 }
 0x6ee   : > { %v1124_v30 = vpop.f32.mrb[12].mxu1 }
 0x6ef   : > { %1636 = vrot.lane.b32.xlu1 %v1124_v30, %s2176_s10  ;;  %v1879_v0 = vpop.f32.mrb[13].mxu1 }
 0x6f2   : > { %v1289_v31 = vpop.f32.mrb[14].mxu1 }
 0x6f3   : > { %1640 = vrot.lane.b32.xlu0 %v1289_v31, %s2175_s9  ;;  %v1889_v32 = vpop.f32.mrb[15].mxu1  ;;  %s2185_s9 = smov [#allocation7]  }
 0x6f4   : > { %s2096_s10 = sshll.u32 %s2185_s9, 4  ;;  %s2097_s10 = int_to_ptr.vmem [resolvable:$false] %s2096_s10 }
 0x6f5   : > { %s2098_s11 = scalar_lea.vmem %s2097_s10, 256 }
 0x6f6   : > { %v1454_v33 = vpop.f32.mrb[16].mxu1 }
 0x6f7   : > { %1644 = vrot.lane.b32.xlu1 %v1454_v33, %s2173_s5  ;;  %v1899_v34 = vpop.f32.mrb[17].mxu1 }
 0x6fa   : > { %v1619_v35 = vpop.f32.mrb[18].mxu1 }
 0x6fb   : > { %1648 = vrot.lane.b32.xlu0 %v1619_v35, %s2170_s4  ;;  %v1909_v36 = vpop.f32.mrb[19].mxu1  ;;  %s200_s4 = scalar_lea.vmem [#allocation7], %s1766_s22 }
 0x6fc   : > { %s1679_s25 = sshll.u32 %s200_s4, 4  ;;  %s2550_s25 = int_to_ptr.vmem [resolvable:$true] %s1679_s25 }
 0x6fd   : > { %s2092_s22 = scalar_lea.vmem %s2550_s25, 128  ;;  %p2099_p10 = scmp.lt.s32.totalorder %s2550_s25, %s2097_s10 }
 0x6fe   : > { %p2093_p4 = scmp.ne.s32.totalorder %s2550_s25, %s2092_s22  ;;  %p2100_p13 = scmp.lt.s32.totalorder %s2098_s11, %s2092_s22 }
 0x700   : > { %p2094_p6 = pnand %p2093_p4, %p2297_p12  ;;  %p2101_p3 = por %p2100_p13, %p2099_p10 }
 0x702   : > { %p2095_p8 = pneg %p2094_p6 }
 0x704   : > { %p2102_p7 = pnand %p2101_p3, %p2095_p8 }
 0x755   : > { %v1625_v37 = vpop.permute.xlu0 %1624 }
 0x756   : > { %v1651_v42 = vsel %vm308_vm2, %v2460_v15, %v1625_v37 }
 0x759   : > { %v1629_v39 = vpop.permute.xlu1 %1628 }
 0x75a   : > { %v1653_v43 = vsel %vm1652_vm3, %v1651_v42, %v1629_v39 }
 0x75d   : > { %v1633_v40 = vpop.permute.xlu0 %1632 }
 0x75e   : > { %v1655_v45 = vsel %vm1654_vm4, %v1653_v43, %v1633_v40 }
 0x761   : > { %v1637_v41 = vpop.permute.xlu1 %1636 }
 0x762   : > { %v1657_v47 = vsel %vm1656_vm5, %v1655_v45, %v1637_v41 }
 0x765   : > { %v1641_v44 = vpop.permute.xlu0 %1640 }
 0x766   : > { %v1659_v48 = vsel %vm1658_vm6, %v1657_v47, %v1641_v44 }
 0x769   : > { %v1645_v46 = vpop.permute.xlu1 %1644 }
 0x76a   : > { %v1661_v49 = vsel %vm1660_vm7, %v1659_v48, %v1645_v46 }
 0x76d   : > { %v1649_v50 = vpop.permute.xlu0 %1648 }
 0x76e   : > { %v1663_v15 = vsel %vm1662_vm8, %v1661_v49, %v1649_v50 }
 0x76f   : > { %1664 = vst.msk [vmem:[%s200_s4] sm:$0xff] %vm230_vm0, %v1663_v15 }
 0x770   : > { %2105 = shalt.err (!%p2102_p7)
}
 0x771   : > { %s2106_s30 = scalar_lea.hbm %s2548_s8, 128  ;;  %s2110_s29 = scalar_lea.hbm %s2596_s3, 256 }
 0x772   : > { %p2107_p9 = scmp.ne.s32.totalorder %s2548_s8, %s2106_s30  ;;  %p2111_p0 = scmp.lt.u32.totalorder %s2548_s8, %s2596_s3 }
 0x773   : > { %p2112_p11 = scmp.lt.u32.totalorder %s2110_s29, %s2106_s30  ;;  %p2114_p4 = scmp.lt.u32.totalorder %s2106_s30, %s2548_s8 }
 0x774   : > { %p2108_p2 = pnand %p2107_p9, %p2297_p12 }
 0x775   : > { %p2113_p1 = por %p2112_p11, %p2111_p0 }
 0x776   : > { %p2109_p5 = pneg %p2108_p2 }
 0x777   : > { %p2115_p6 = por %p2114_p4, %p2113_p1 }
 0x779   : > { %p2116_p8 = pnand %p2115_p6, %p2109_p5 }
 0x77b   : > { %2119 = shalt.err (!%p2116_p8)
}
 0x77c   : > { %1932 = dma.vmem_to_hbm [thread:$0]  (%p2297_p12), %s2550_s25, 128, %s2548_s8, %s1666_s16  }
 0x77d PF: > { %s1691_s7 = sand.u32 1, %s2150_s12   ;;  %p2611_p10 = scmp.ne.s32.totalorder %s2601_s19, 0 }
 0x77e   : > { %p2612_p13 = scmp.ge.s32.totalorder %s2162_s15, 2  ;;  %s1692_s18 = scalar_lea.sflag [#allocation4], %s1691_s7 }
 0x780   : > { %p1943_p3 = pnand %p2612_p13, %p2611_p10 }
 0x782   : > { %2145 = dma.done.wait (!%p1943_p3), %s1692_s18, 128  }
 0x783   : > { %2147 = vsyncadd (!%p1943_p3), %s1692_s18, 4294967168  ;;  %p17_p7 = scmp.ge.s32.totalorder %s2262_s24, 4   ;;  %s2613_s12 = smov %s2154_s13 }
 0x784   : > { %s2614_s13 = smov %s2158_s14  ;;  %s2615_s14 = smov %s2293_s17 }
 0x785   : > { %s2616_s15 = smov %s2262_s24  ;;  %19 = sbr.rel (!%p17_p7) target bundleno = 6 (0x6), region = 81 }
 0x78c   :  { %1697 = vsyncpa [#allocation3], 1 }
 0x78d   :  { %1699 = vsyncpa [#allocation3 + $0x1], 1 }
 0x78e   :  { %1700 = vsyncpa [#allocation6], 1 }
 0x78f   :  { %1701 = vsyncpa [#allocation4], 1 }
 0x790   :  { %1703 = vsyncpa [#allocation4 + $0x1], 1 }

</bundles_post_ra>
